<compile_context>
chip_gen: v7x
topology: tpu7x:2x2x1
jax: 0.10.0
libtpu: 0.0.40
codegen_flags: <defaults>
</compile_context>

<pallas_src>
import math
import functools

import jax
import jax.numpy as jnp
from jax.experimental import pallas as pl
from jax.experimental.pallas import tpu as pltpu

NU = 3                                  # DPFP expansion factor (d_key = 2 * NU * d_mem)
VMEM_LIMIT_BYTES = 32 * 1024 * 1024     # raise v5e's 16 MiB default; safe on v6e / v7x


def _round_up(x, m):
    return ((x + m - 1) // m) * m


# ----------------------------------------------------------------------------
# One-off probe: pin down pltpu.roll's shift convention so the DPFP feature map
# reproduces torch.roll(shifts=j, dims=-1) exactly, regardless of rotate direction.
# ----------------------------------------------------------------------------
_ROLL_SIGN = None


def _roll_sign():
    global _ROLL_SIGN
    if _ROLL_SIGN is not None:
        return _ROLL_SIGN
    n = 128
    x = jnp.tile(jnp.arange(n, dtype=jnp.float32)[None, :], (8, 1))

    def k(x_ref, o_ref):
        o_ref[...] = pltpu.roll(x_ref[...], shift=1, axis=1)

    y = pl.pallas_call(k, out_shape=jax.ShapeDtypeStruct((8, n), jnp.float32))(x)
    if jnp.array_equal(y, jnp.roll(x, 1, axis=1)):
        _ROLL_SIGN = 1
    elif jnp.array_equal(y, jnp.roll(x, -1, axis=1)):
        _ROLL_SIGN = -1
    else:
        raise RuntimeError("unexpected pltpu.roll semantics")
    return _ROLL_SIGN


# ----------------------------------------------------------------------------
# Kernel 1: fused associate()  +  wrapped-layer stand-in   (seq-tiled)
# ----------------------------------------------------------------------------
def _assoc_layer_kernel(shifts, h_ref, wq2_ref, wl_ref, bl_ref, wmem_ref, z_ref, o_ref):
    two_dm = wq2_ref.shape[1]                                       # 2 * d_mem
    h = h_ref[0]                                                    # (TS, D) f32
    hb = h.astype(jnp.bfloat16)

    # fused +/- query projection: xc = relu(h @ [Wq | -Wq]) == [relu(q), relu(-q)]
    xc = jnp.maximum(
        jnp.dot(hb, wq2_ref[...], preferred_element_type=jnp.float32), 0.0)

    t = h.shape[0]
    sumsq = jnp.zeros((t, 1), jnp.float32)
    zdot = jnp.zeros((t, 1), jnp.float32)
    num = jnp.zeros_like(h)
    # chunked DPFP + chunked (phi @ W_mem) / <phi, z>: never builds the (TS, d_key) mq
    for j in range(1, NU + 1):
        c = xc * pltpu.roll(xc, shift=shifts[j - 1], axis=1)        # (TS, 2*d_mem) chunk
        lo = (j - 1) * two_dm
        sumsq = sumsq + jnp.sum(c * c, axis=-1, keepdims=True)
        zdot = zdot + jnp.sum(c * z_ref[0, :, lo:lo + two_dm], axis=-1, keepdims=True)
        num = num + jnp.dot(c.astype(jnp.bfloat16),
                            wmem_ref[0, lo:lo + two_dm, :].astype(jnp.bfloat16),
                            preferred_element_type=jnp.float32)

    inv_n = jax.lax.rsqrt(jnp.maximum(sumsq, 1e-24))                # == 1/max(||phi||,1e-12)
    denom = zdot * inv_n + 1e-5
    h2 = num * (inv_n * pl.reciprocal(denom, approx=True)) + h      # associate + residual

    # wrapped-layer stand-in: tanh(linear) + residual, fused (no HBM round trip of h2)
    y = jnp.dot(h2.astype(jnp.bfloat16), wl_ref[...],
                preferred_element_type=jnp.float32) + bl_ref[...]
    o_ref[0] = (jnp.tanh(y) + h2).astype(o_ref.dtype)


def _layer_only_kernel(h_ref, wl_ref, bl_ref, o_ref):
    h = h_ref[0]
    y = jnp.dot(h.astype(jnp.bfloat16), wl_ref[...],
                preferred_element_type=jnp.float32) + bl_ref[...]
    o_ref[0] = (jnp.tanh(y) + h).astype(o_ref.dtype)


def assoc_layer_call(h, wq2_bf, wl_bf, bl, w_mem, z, shifts, seq_tile):
    B, S, D = h.shape
    d_key = w_mem.shape[1]
    two_dm = wq2_bf.shape[1]
    assert S % seq_tile == 0
    z3 = z.reshape(B, 1, d_key)
    kern = functools.partial(_assoc_layer_kernel, shifts)
    return pl.pallas_call(
        kern,
        out_shape=jax.ShapeDtypeStruct((B, S, D), h.dtype),
        grid=(B, S // seq_tile),
        in_specs=[
            pl.BlockSpec((1, seq_tile, D), lambda b, s: (b, s, 0)),
            pl.BlockSpec((D, two_dm), lambda b, s: (0, 0)),
            pl.BlockSpec((D, D), lambda b, s: (0, 0)),
            pl.BlockSpec((1, D), lambda b, s: (0, 0)),
            pl.BlockSpec((1, d_key, D), lambda b, s: (b, 0, 0)),
            pl.BlockSpec((1, 1, d_key), lambda b, s: (b, 0, 0)),
        ],
        out_specs=pl.BlockSpec((1, seq_tile, D), lambda b, s: (b, s, 0)),
        compiler_params=pltpu.CompilerParams(
            dimension_semantics=("parallel", "parallel"),
            vmem_limit_bytes=VMEM_LIMIT_BYTES),
    )(h, wq2_bf, wl_bf, bl, w_mem, z3)


def layer_only_call(h, wl_bf, bl, seq_tile):
    B, S, D = h.shape
    assert S % seq_tile == 0
    return pl.pallas_call(
        _layer_only_kernel,
        out_shape=jax.ShapeDtypeStruct((B, S, D), h.dtype),
        grid=(B, S // seq_tile),
        in_specs=[
            pl.BlockSpec((1, seq_tile, D), lambda b, s: (b, s, 0)),
            pl.BlockSpec((D, D), lambda b, s: (0, 0)),
            pl.BlockSpec((1, D), lambda b, s: (0, 0)),
        ],
        out_specs=pl.BlockSpec((1, seq_tile, D), lambda b, s: (b, s, 0)),
        compiler_params=pltpu.CompilerParams(
            dimension_semantics=("parallel", "parallel"),
            vmem_limit_bytes=VMEM_LIMIT_BYTES),
    )(h, wl_bf, bl)


# ----------------------------------------------------------------------------
# Kernel 2: update_mem()  (write to associative memory, in place via aliasing)
# ----------------------------------------------------------------------------
def _update_mem_kernel(first_seg, shifts, mem_ref, wkvb_ref, bb_ref, wmem_ref, z_ref,
                       wmem_out_ref, z_out_ref):
    d_key = wmem_ref.shape[1]
    two_dm = d_key // NU                                            # 2 * d_mem
    d = mem_ref.shape[-1]
    m = mem_ref.shape[1]
    kp = _round_up(two_dm, 128)
    dp = _round_up(d, 128)

    mem = mem_ref[0]                                                # (M, D) f32
    # one wide fused projection: [k | -k | v | b], each segment 128-lane padded
    proj = jnp.dot(mem.astype(jnp.bfloat16), wkvb_ref[...],
                   preferred_element_type=jnp.float32)
    xc = jnp.maximum(proj[:, :two_dm], 0.0)                         # == [relu(k), relu(-k)]
    new_mv = proj[:, kp:kp + d]                                     # (M, D)
    mb = jax.nn.sigmoid(proj[:, kp + dp:kp + dp + 1] + bb_ref[0])   # (M, 1); bb from SMEM

    chunks = []
    sumsq = jnp.zeros((m, 1), jnp.float32)
    if not first_seg:
        zdot = jnp.zeros((m, 1), jnp.float32)
        num = jnp.zeros((m, d), jnp.float32)
    for j in range(1, NU + 1):
        c = xc * pltpu.roll(xc, shift=shifts[j - 1], axis=1)        # DPFP chunk (M, 2*d_mem)
        chunks.append(c)
        sumsq = sumsq + jnp.sum(c * c, axis=-1, keepdims=True)
        if not first_seg:
            lo = (j - 1) * two_dm
            zdot = zdot + jnp.sum(c * z_ref[0, :, lo:lo + two_dm], axis=-1, keepdims=True)
            num = num + jnp.dot(c.astype(jnp.bfloat16),
                                wmem_ref[0, lo:lo + two_dm, :].astype(jnp.bfloat16),
                                preferred_element_type=jnp.float32)

    inv_n = jax.lax.rsqrt(jnp.maximum(sumsq, 1e-24))                # per-token 1/||phi||

    if first_seg:
        mv = new_mv                                                 # prev_mv == 0
        coef = jnp.ones_like(inv_n)                                 # correction coef == 1
    else:
        denom = zdot * inv_n + 1e-5                                 # (M, 1)
        prev_mv = num * (inv_n * pl.reciprocal(denom, approx=True))
        mv = new_mv - prev_mv
        norm2 = sumsq * inv_n * inv_n                               # ||mk||^2 (~1)
        # eps on norm2 guards the 0/0 corner case flagged in review (torch has none)
        coef = jnp.clip(
            1.0 - denom * pl.reciprocal(jnp.maximum(norm2, 1e-12), approx=True), 0.0, 1.0)
    mvb = (mv * mb).astype(jnp.bfloat16)                            # gated value rows

    # chunk-wise write-back:  W_mem += mk^T @ (mv*mb),  z += sum_m coef*mk
    for j in range(1, NU + 1):
        lo = (j - 1) * two_dm
        mk_j = chunks[j - 1] * inv_n                                # normalized chunk (M, 2*d_mem)
        assoc_j = jax.lax.dot_general(
            mk_j.astype(jnp.bfloat16), mvb,
            dimension_numbers=(((0,), (0,)), ((), ())),
            preferred_element_type=jnp.float32)                     # (2*d_mem, D)
        wmem_out_ref[0, lo:lo + two_dm, :] = wmem_ref[0, lo:lo + two_dm, :] + assoc_j
        z_out_ref[0, :, lo:lo + two_dm] = (
            z_ref[0, :, lo:lo + two_dm] + jnp.sum(coef * mk_j, axis=0, keepdims=True))


def update_mem_call(mem_tokens, w_kvb_bf, bb, w_mem, z, shifts, first_seg):
    B, M, D = mem_tokens.shape
    d_key = w_mem.shape[1]
    P = w_kvb_bf.shape[1]
    z3 = z.reshape(B, 1, d_key)
    kern = functools.partial(_update_mem_kernel, bool(first_seg), shifts)
    w_mem_new, z_new = pl.pallas_call(
        kern,
        out_shape=(jax.ShapeDtypeStruct((B, d_key, D), jnp.float32),
                   jax.ShapeDtypeStruct((B, 1, d_key), jnp.float32)),
        grid=(B,),
        in_specs=[
            pl.BlockSpec((1, M, D), lambda b: (b, 0, 0)),
            pl.BlockSpec((D, P), lambda b: (0, 0)),
            pl.BlockSpec(memory_space=pltpu.MemorySpace.SMEM),       # bb scalar -> SMEM
            pl.BlockSpec((1, d_key, D), lambda b: (b, 0, 0)),
            pl.BlockSpec((1, 1, d_key), lambda b: (b, 0, 0)),
        ],
        out_specs=(
            pl.BlockSpec((1, d_key, D), lambda b: (b, 0, 0)),
            pl.BlockSpec((1, 1, d_key), lambda b: (b, 0, 0)),
        ),
        input_output_aliases={3: 0, 4: 1},                           # in-place W_mem / z
        compiler_params=pltpu.CompilerParams(
            dimension_semantics=("parallel",),
            vmem_limit_bytes=VMEM_LIMIT_BYTES),
    )(mem_tokens, w_kvb_bf, bb, w_mem, z3)
    return w_mem_new, z_new.reshape(B, d_key)


# ----------------------------------------------------------------------------
# Stateful wrapper mirroring AssociativeLayerWrapper.forward
# (first_seg is still a static Python flag -> two compiled variants; fine for the demo)
# ----------------------------------------------------------------------------
class AssociativeLayerWrapperPallas:
    def __init__(self, d_model, num_mem_tokens, d_mem, batch_size, key, seq_tile=256):
        # lane-dense layout (perf feedback): 2*d_mem (and d_key = 6*d_mem) multiple of 128
        assert (2 * d_mem) % 128 == 0, "choose d_mem so that 2*d_mem is a multiple of 128"
        assert seq_tile % 8 == 0
        self.d_model = d_model
        self.num_mem_tokens = num_mem_tokens
        self.d_mem = d_mem
        self.d_key = 2 * NU * d_mem
        self.seq_tile = seq_tile

        s = 1.0 / math.sqrt(d_model)
        k = jax.random.split(key, 6)
        # torch Linear weights are (out, in); stored here pre-transposed to (in, out).
        wq = jax.random.uniform(k[0], (d_model, d_mem), jnp.float32, -s, s)
        wk = jax.random.uniform(k[1], (d_model, d_mem), jnp.float32, -s, s)
        # NOTE: torch zero-inits W_mv; random values here to exercise the full path.
        wv = jax.random.uniform(k[2], (d_model, d_model), jnp.float32, -s, s)
        wb = jax.random.uniform(k[3], (d_model, 1), jnp.float32, -s, s)     # n_heads = 1
        self.bb = jax.random.uniform(k[4], (1,), jnp.float32, -s, s)
        wl = jax.random.uniform(k[5], (d_model, d_model), jnp.float32, -s, s)
        self.bl = jnp.zeros((1, d_model), jnp.float32)

        # --- bf16 MXU-native weight packing -----------------------------------
        # associate: xc = relu(h @ [Wq | -Wq])  (folds the relu(x)/relu(-x) split into
        #            the projection and doubles N for better MXU utilization)
        self.wq2_bf = jnp.concatenate([wq, -wq], axis=1).astype(jnp.bfloat16)
        # update_mem: one wide projection [Wk | -Wk | Wv | Wb], segments padded to 128
        kp = _round_up(2 * d_mem, 128)
        dp = _round_up(d_model, 128)
        w_kvb = jnp.zeros((d_model, kp + dp + 128), jnp.float32)
        w_kvb = w_kvb.at[:, :d_mem].set(wk)
        w_kvb = w_kvb.at[:, d_mem:2 * d_mem].set(-wk)
        w_kvb = w_kvb.at[:, kp:kp + d_model].set(wv)
        w_kvb = w_kvb.at[:, kp + dp:kp + dp + 1].set(wb)
        self.w_kvb_bf = w_kvb.astype(jnp.bfloat16)
        self.wl_bf = wl.astype(jnp.bfloat16)
        self._kp, self._dp = kp, dp

        # static pltpu.roll shifts reproducing torch.roll(shifts=j, dims=-1)
        sign = _roll_sign()
        n = 2 * d_mem
        self.shifts = tuple((sign * j) % n for j in range(1, NU + 1))

        # associative-memory state (pre-broadcast over batch; zero-init as in torch)
        self.w_mem = jnp.zeros((batch_size, self.d_key, d_model), jnp.float32)
        self.z = jnp.zeros((batch_size, self.d_key), jnp.float32)
        self.first_seg = True
        self.generate_mode = False
        self.seg_num = 0

    def ref_params(self):
        """f32 copies of the (bf16-stored) weights for the pure-JAX reference."""
        kp, dp = self._kp, self._dp
        f32 = jnp.float32
        return dict(
            wq_t=self.wq2_bf[:, :self.d_mem].astype(f32),
            wk_t=self.w_kvb_bf[:, :self.d_mem].astype(f32),
            wv_t=self.w_kvb_bf[:, kp:kp + self.d_model].astype(f32),
            wb_t=self.w_kvb_bf[:, kp + dp:kp + dp + 1].astype(f32),
            bb=self.bb, wl_t=self.wl_bf.astype(f32), bl=self.bl,
            num_mem_tokens=self.num_mem_tokens)

    def __call__(self, hidden_states):
        if self.first_seg:
            out0 = layer_only_call(hidden_states, self.wl_bf, self.bl, self.seq_tile)
        else:
            out0 = assoc_layer_call(hidden_states, self.wq2_bf, self.wl_bf, self.bl,
                                    self.w_mem, self.z, self.shifts, self.seq_tile)
        out = (out0,)
        if not self.generate_mode:
            mem_tokens = out0[:, -self.num_mem_tokens:]
            self.w_mem, self.z = update_mem_call(
                mem_tokens, self.w_kvb_bf, self.bb, self.w_mem, self.z,
                self.shifts, self.first_seg)
            self.seg_num += 1
            self.first_seg = False
        return out


# ----------------------------------------------------------------------------
# Pure-JAX reference (mirrors the torch code 1:1, n_heads = 1, f32 math)
# ----------------------------------------------------------------------------
def _phi_ref(x):
    xc = jnp.concatenate([jnp.maximum(x, 0.0), jnp.maximum(-x, 0.0)], axis=-1)
    rolled = jnp.concatenate([jnp.roll(xc, j, axis=-1) for j in range(1, NU + 1)], axis=-1)
    rep = jnp.concatenate([xc] * NU, axis=-1)
    return rep * rolled


def _l2n_ref(x):
    n = jnp.linalg.norm(x, axis=-1, keepdims=True)
    return x / jnp.maximum(n, 1e-12)


def ref_forward(h, P, w_mem, z, first_seg):
    if not first_seg:
        mq = _l2n_ref(_phi_ref(h @ P["wq_t"]))
        num = jnp.einsum("bjk,bkt->bjt", mq, w_mem)
        denom = jnp.einsum("bk,bjk->bj", z, mq)[..., None] + 1e-5
        h = num / denom + h
    y = jnp.tanh(h @ P["wl_t"] + P["bl"]) + h
    mem = y[:, -P["num_mem_tokens"]:]
    mk = _l2n_ref(_phi_ref(mem @ P["wk_t"]))
    new_mv = mem @ P["wv_t"]
    if first_seg:
        prev_mv = jnp.zeros_like(new_mv)
        coef = 1.0
    else:
        num = jnp.einsum("bjk,bkt->bjt", mk, w_mem)
        denom = jnp.einsum("bd,bmd->bm", z, mk)[..., None] + 1e-5
        prev_mv = num / denom
        norm2 = jnp.maximum(jnp.sum(mk * mk, axis=-1, keepdims=True), 1e-12)  # eps (see kernel)
        coef = jnp.clip(1.0 - denom / norm2, 0.0, 1.0)
    mv = new_mv - prev_mv
    mb = jax.nn.sigmoid(mem @ P["wb_t"] + P["bb"])
    assoc = jnp.einsum("bmk,bmt,bm->bkt", mk, mv, mb[..., 0])
    return (y,), w_mem + assoc, z + (coef * mk).sum(axis=-2)


# ----------------------------------------------------------------------------
if __name__ == "__main__":
    # small but lane/sublane-aligned shapes: d_key = 6*d_mem = 384 (3 x 128 lanes)
    B, S, D, DMEM, NMEM, TS = 2, 256, 128, 64, 16, 128
    key = jax.random.PRNGKey(0)
    kp_, k1, k2, k3 = jax.random.split(key, 4)

    wrapper = AssociativeLayerWrapperPallas(D, NMEM, DMEM, B, kp_, seq_tile=TS)
    hs = [jax.random.normal(kk, (B, S, D), jnp.float32) for kk in (k1, k2, k3)]

    outs = []
    for h in hs:                         # seg1: first_seg path; seg2/3: associate + correction
        outs.append(wrapper(h)[0])
    jax.block_until_ready(outs[-1])

    # verify against the pure-JAX reference (f32 math, same bf16-stored weights).
    # Tolerance reflects the bf16 MXU operands / approx-reciprocal used in the kernels.
    P = wrapper.ref_params()
    wm = jnp.zeros((B, wrapper.d_key, D), jnp.float32)
    zz = jnp.zeros((B, wrapper.d_key), jnp.float32)
    refs = []
    first = True
    for h in hs:
        (r,), wm, zz = ref_forward(h, P, wm, zz, first)
        refs.append(r)
        first = False

    checks = [(outs[i], refs[i], f"out_seg{i + 1}") for i in range(len(hs))]
    checks += [(wrapper.w_mem, wm, "W_mem"), (wrapper.z, zz, "z")]
    for a, b_, name in checks:
        if not jnp.allclose(a, b_, rtol=4e-2, atol=4e-2):
            raise SystemExit(
                f"MISMATCH in {name}: max abs err {float(jnp.max(jnp.abs(a - b_)))}")

    print("KERNEL_OK")
</pallas_src>

<mosaic_0001>
module attributes {stable_mosaic.version = 11 : i64} {
  func.func @k(%arg0: memref<8x128xf32, #tpu.memory_space<vmem>>, %arg1: memref<8x128xf32, #tpu.memory_space<vmem>>) attributes {dimension_semantics = [], scalar_prefetch = 0 : i64, scratch_operands = 0 : i64, tpu.core_type = #tpu.core_type<tc>} {
    %c0 = arith.constant 0 : index
    %c0_0 = arith.constant 0 : index
    %0 = vector.load %arg0[%c0, %c0_0] : memref<8x128xf32, #tpu.memory_space<vmem>>, vector<8x128xf32>
    %c1_i32 = arith.constant 1 : i32
    %1 = tpu.dynamic_rotate %0 by %c1_i32 dim 1 : vector<8x128xf32>, i32 -> vector<8x128xf32>
    %c0_1 = arith.constant 0 : index
    %c0_2 = arith.constant 0 : index
    %2 = vector.load %arg1[%c0_1, %c0_2] : memref<8x128xf32, #tpu.memory_space<vmem>>, vector<8x128xf32>
    tpu.vector_store %arg1[%c0_1, %c0_2], %1 {strides = array<i32>} : memref<8x128xf32, #tpu.memory_space<vmem>>, vector<8x128xf32>,
    return
  }
}

</mosaic_0001>

<bundles_post_ra>
// kernel: tpu_custom_call.1
= control target key start
LH: loop header
LB: loop body
LE: loop exit
PB: predicated region body
PF: predicated region fallthrough
CT: control target
= control target key end

     0   :  { %6 = vsyncpa [#allocation3], 0  ;;  %s128_s0 = inlined_call_operand.hbm [shape: f32[8,128], index: 0, kind: input, shape index: {}]   ;;  %s129_s1 = inlined_call_operand.hbm [shape: f32[8,128], index: 1, kind: output, shape index: {}]  }
   0x1   :  { %7 = vsyncpa [#allocation4], 0  ;;  %s91_s6 = smov [#allocation2]   ;;  %s43_s10 = scalar_lea.hbm %s128_s0, 128 }
   0x2   :  { %s14_s7 = sshll.u32 %s91_s6, 4  ;;  %p44_p0 = scmp.ne.s32.totalorder %s128_s0, %s43_s10  ;;  %s15_s7 = int_to_ptr.vmem [resolvable:$true] %s14_s7 }
   0x3   :  { %p47_p1 = scmp.lt.u32.totalorder %s43_s10, %s128_s0 }
   0x5   :  { %p49_p2 = pnand %p47_p1, %p44_p0 }
   0x7   :  { %52 = shalt.err (!%p49_p2)
}
   0x8   :  { %s53_s15 = scalar_lea.vmem %s15_s7, 128  ;;  %p58_p4 = scmp.lt.s32.totalorder %s15_s7, %s15_s7 }
   0x9   :  { %p54_p3 = scmp.ne.s32.totalorder %s15_s7, %s53_s15  ;;  %p59_p5 = scmp.lt.s32.totalorder %s53_s15, %s53_s15 }
   0xb   :  { %p60_p6 = por %p59_p5, %p58_p4 }
   0xd   :  { %p61_p7 = pnand %p60_p6, %p54_p3 }
   0xf   :  { %64 = shalt.err (!%p61_p7)
}
  0x10   :  { %17 = dma.hbm_to_vmem [thread:$0]  %s128_s0, 128, %s15_s7, [#allocation3]  }
  0x11   :  { %87 = dma.done.wait [#allocation3], 128  }
  0x12   :  { %88 = vsyncadd [#allocation3], 4294967168  ;;  %v21_v0 = vld [vmem:[#allocation2] sm:$0xff]  ;;  %s92_s18 = smov 1   ;;  %s93_s19 = smov [#allocation5]  }
  0x13   :  { %22 = vrot.lane.b32.xlu0 %v21_v0, %s92_s18  ;;  %s31_s20 = sshll.u32 %s93_s19, 4  ;;  %s32_s20 = int_to_ptr.vmem [resolvable:$true] %s31_s20 }
  0x14   :  { %s65_s21 = scalar_lea.vmem %s32_s20, 128  ;;  %p70_p9 = scmp.lt.s32.totalorder %s32_s20, %s32_s20 }
  0x15   :  { %p66_p8 = scmp.ne.s32.totalorder %s32_s20, %s65_s21  ;;  %p71_p10 = scmp.lt.s32.totalorder %s65_s21, %s65_s21 }
  0x17   :  { %p72_p11 = por %p71_p10, %p70_p9 }
  0x19   :  { %p73_p12 = pnand %p72_p11, %p66_p8 }
  0x85   :  { %v23_v1 = vpop.permute.xlu0 %22 }
  0x86   :  { %24 = vst [vmem:[#allocation5] sm:$0xff] %v23_v1 }
  0x87   :  { %76 = shalt.err (!%p73_p12)
}
  0x88   :  { %s77_s0 = scalar_lea.hbm %s129_s1, 128 }
  0x89   :  { %p78_p13 = scmp.ne.s32.totalorder %s129_s1, %s77_s0  ;;  %p81_p0 = scmp.lt.u32.totalorder %s77_s0, %s129_s1 }
  0x8b   :  { %p83_p1 = pnand %p81_p0, %p78_p13 }
  0x8d   :  { %86 = shalt.err (!%p83_p1)
}
  0x8e   :  { %34 = dma.vmem_to_hbm [thread:$0]  %s32_s20, 128, %s129_s1, [#allocation4]  }
  0x8f   :  { %89 = dma.done.wait [#allocation4], 128  }
  0x90   :  { %90 = vsyncadd [#allocation4], 4294967168 }
  0x91   :  { %38 = vsyncpa [#allocation3], 1 }
  0x92   :  { %39 = vsyncpa [#allocation4], 1 }

</bundles_post_ra>
